<compile_context>
chip_gen: v6e
topology: v6e:2x2x1
jax: 0.10.0
libtpu: 0.0.40
codegen_flags: <defaults>
</compile_context>

<pallas_src>
import jax
import jax.numpy as jnp
from jax.experimental import pallas as pl
from jax.experimental.pallas import tpu as pltpu


# ----------------------------------------------------------------------------
# Pallas kernel: gathered-row GCN aggregation
#   out[r] = d_sel[r] * ( sum_k A_sel[r, k] * XWd[k] + XWd_sel[r] ) + bias
# ----------------------------------------------------------------------------
def gcn_rows_kernel(a_ref, xwd_ref, dsel_ref, sloop_ref, b_ref, o_ref, acc_ref):
    k = pl.program_id(1)

    @pl.when(k == 0)
    def _init():
        acc_ref[...] = jnp.zeros_like(acc_ref)

    # bf16 x bf16 -> f32 accumulation on the MXU.
    acc_ref[...] += jnp.dot(a_ref[...], xwd_ref[...],
                            preferred_element_type=jnp.float32)

    @pl.when(k == pl.num_programs(1) - 1)
    def _finalize():
        # Row-wise D^{-1/2} scale, self-loop term and bias (cheap VPU epilogue).
        o_ref[...] = (dsel_ref[...] * (acc_ref[...] + sloop_ref[...])
                      + b_ref[...]).astype(o_ref.dtype)


def _pick_tile(dim, candidates):
    for t in candidates:
        if dim % t == 0:
            return t
    return dim  # full-dim block (always legal)


def gcn_gather_embedding(x, features, train_mat, weight, bias):
    """(D^{-1/2}(A+I)D^{-1/2} @ features @ weight + bias)[x] via Pallas."""
    n, _ = features.shape
    e = weight.shape[1]
    b, nf = x.shape

    # ---- cheap glue, O(N*E): normalization vector + reassociated X @ W ----
    deg = jnp.sum(train_mat, axis=1) + 1.0          # row degree of (A + I)
    d = jax.lax.rsqrt(deg)                          # D^{-1/2}
    xw = jnp.dot(features, weight)                  # (N, E)  reassociated chain
    xwd = d[:, None] * xw                           # fold column D^{-1/2} scale

    # Gather only the rows the FM needs (B * num_fields of them).
    x_flat = x.reshape(-1).astype(jnp.int32)
    m = x_flat.shape[0]
    pad = (-m) % 8                                  # sublane-align the row count
    if pad:
        x_flat = jnp.concatenate([x_flat, jnp.zeros((pad,), jnp.int32)])
    m_pad = m + pad

    a_sel = jnp.take(train_mat.astype(jnp.bfloat16), x_flat, axis=0)  # (Mp, N)
    d_sel = jnp.take(d, x_flat, axis=0)[:, None]                      # (Mp, 1)
    sloop = jnp.take(xwd, x_flat, axis=0)                             # (Mp, E)
    xwd_bf = xwd.astype(jnp.bfloat16)                                 # (N, E)
    bias2d = bias.reshape(1, e).astype(jnp.float32)

    tile_m = _pick_tile(m_pad, (256, 128, 64, 32, 16, 8))
    tile_k = _pick_tile(n, (512, 256, 128))

    # VMEM budget estimate (lane/sublane padded, double-buffered), clamped so it
    # never goes below the default scoped limit nor above v7x physical VMEM.
    def _padded(r, c, itemsize):
        return (-(-r // 8) * 8) * (-(-c // 128) * 128) * itemsize
    est = (2 * (_padded(tile_m, tile_k, 2) + _padded(tile_k, e, 2)
                + _padded(tile_m, 1, 4) + _padded(tile_m, e, 4)
                + _padded(1, e, 4) + _padded(tile_m, e, 4))
           + _padded(tile_m, e, 4))
    vmem_limit = int(min(max(2 * est, 32 * 1024 * 1024), 64 * 1024 * 1024))

    out = pl.pallas_call(
        gcn_rows_kernel,
        out_shape=jax.ShapeDtypeStruct((m_pad, e), jnp.float32),
        grid=(m_pad // tile_m, n // tile_k),
        in_specs=[
            pl.BlockSpec((tile_m, tile_k), lambda i, k: (i, k)),  # gathered A rows
            pl.BlockSpec((tile_k, e), lambda i, k: (k, 0)),       # col-scaled X@W
            pl.BlockSpec((tile_m, 1), lambda i, k: (i, 0)),       # row D^{-1/2}
            pl.BlockSpec((tile_m, e), lambda i, k: (i, 0)),       # self-loop term
            pl.BlockSpec((1, e), lambda i, k: (0, 0)),            # bias
        ],
        out_specs=pl.BlockSpec((tile_m, e), lambda i, k: (i, 0)),
        scratch_shapes=[pltpu.VMEM((tile_m, e), jnp.float32)],
        compiler_params=pltpu.CompilerParams(
            dimension_semantics=("parallel", "arbitrary"),
            vmem_limit_bytes=vmem_limit),
    )(a_sel, xwd_bf, d_sel, sloop, bias2d)

    return out[:m].reshape(b, nf, e)


def fm_gcn_model_forward(x, features, train_mat, w_gcn, b_gcn, w_lin, b_lin):
    """Full FactorizationMachineModel_withGCN.forward."""
    emb = gcn_gather_embedding(x, features, train_mat, w_gcn, b_gcn)  # (B, F, E)

    # FM second-order term + linear term: O(B*F*E) glue, negligible vs. kernel.
    # FeaturesLinear source not provided; modeled as nn.Embedding(num_nodes, 1)
    # over the same node ids + scalar bias (standard pytorch-fm definition).
    sum_f = jnp.sum(emb, axis=1)                                      # (B, E)
    fm = 0.5 * jnp.sum(sum_f ** 2 - jnp.sum(emb ** 2, axis=1),
                       axis=1, keepdims=True)                         # (B, 1)
    lin = jnp.sum(jnp.take(w_lin, x, axis=0), axis=1) + b_lin         # (B, 1)
    return (lin + fm)[:, 0]                                           # squeeze(1)


if __name__ == "__main__":
    # Small, deterministic synthetic setup consistent with the module.
    num_nodes = 64        # rows of `features` / size of train_mat
    field_dims = 32       # GCNConv in_channels (node feature dim)
    embed_dim = 16        # GCNConv out_channels
    batch_size = 2
    num_fields = 4

    key = jax.random.PRNGKey(0)
    k_feat, k_adj, k_w, k_lin, k_x = jax.random.split(key, 5)

    features = jax.random.normal(k_feat, (num_nodes, field_dims), dtype=jnp.float32)

    # Deterministic symmetric 0/1 adjacency (train_mat), no self loops.
    upper = (jax.random.uniform(k_adj, (num_nodes, num_nodes)) < 0.1).astype(jnp.float32)
    upper = jnp.triu(upper, k=1)
    train_mat = upper + upper.T

    # Glorot-uniform GCN weight, zero bias (GCNConv defaults).
    limit = jnp.sqrt(6.0 / (field_dims + embed_dim))
    w_gcn = jax.random.uniform(k_w, (field_dims, embed_dim),
                               minval=-limit, maxval=limit, dtype=jnp.float32)
    b_gcn = jnp.zeros((embed_dim,), dtype=jnp.float32)

    # FeaturesLinear parameters.
    w_lin = 0.01 * jax.random.normal(k_lin, (num_nodes, 1), dtype=jnp.float32)
    b_lin = jnp.zeros((1,), dtype=jnp.float32)

    # x: Long tensor of size (batch_size, num_fields) — node indices.
    x = jax.random.randint(k_x, (batch_size, num_fields), 0, num_nodes, dtype=jnp.int32)

    scores = jax.jit(fm_gcn_model_forward)(x, features, train_mat,
                                           w_gcn, b_gcn, w_lin, b_lin)
    scores = jax.block_until_ready(scores)
    emb = jax.block_until_ready(
        jax.jit(gcn_gather_embedding)(x, features, train_mat, w_gcn, b_gcn))

    # ---- pure-JAX f32 reference (exact PyTorch semantics) ----
    a_tilde = train_mat + jnp.eye(num_nodes, dtype=jnp.float32)
    deg = jnp.sum(a_tilde, axis=1)
    dis = jnp.where(deg > 0, 1.0 / jnp.sqrt(deg), 0.0)
    a_hat = a_tilde * dis[:, None] * dis[None, :]
    h = a_hat @ features @ w_gcn + b_gcn
    emb_ref = h[x]
    sum_f_ref = jnp.sum(emb_ref, axis=1)
    fm_ref = 0.5 * jnp.sum(sum_f_ref ** 2 - jnp.sum(emb_ref ** 2, axis=1),
                           axis=1, keepdims=True)
    lin_ref = jnp.sum(w_lin[x], axis=1) + b_lin
    ref_scores = (lin_ref + fm_ref)[:, 0]

    assert scores.shape == (batch_size,)
    assert emb.shape == (batch_size, num_fields, embed_dim)
    # bf16 MXU inputs (f32 accumulation) -> looser tolerance than pure f32.
    assert jnp.allclose(emb, emb_ref, atol=2e-2, rtol=2e-2), \
        float(jnp.max(jnp.abs(emb - emb_ref)))
    assert jnp.allclose(scores, ref_scores, atol=1e-1, rtol=1e-1), \
        float(jnp.max(jnp.abs(scores - ref_scores)))

    # TODO(synk): the attention=True branch (GATConv with dropout) is not
    # implemented; only the default GCNConv path is covered.
    print("KERNEL_OK")
</pallas_src>

<mosaic_0001>
module attributes {stable_mosaic.version = 11 : i64} {
  func.func @gcn_rows_kernel(%arg0: i32, %arg1: i32, %arg2: memref<8x64xbf16, #tpu.memory_space<vmem>>, %arg3: memref<64x16xbf16, #tpu.memory_space<vmem>>, %arg4: memref<8x1xf32, #tpu.memory_space<vmem>>, %arg5: memref<8x16xf32, #tpu.memory_space<vmem>>, %arg6: memref<1x16xf32, #tpu.memory_space<vmem>>, %arg7: memref<8x16xf32, #tpu.memory_space<vmem>>, %arg8: memref<8x16xf32, #tpu.memory_space<vmem>>) attributes {dimension_semantics = [#tpu.dimension_semantics<parallel>, #tpu.dimension_semantics<arbitrary>], iteration_bounds = array<i64: 1, 1>, scalar_prefetch = 0 : i64, scratch_operands = 1 : i64, tpu.core_type = #tpu.core_type<tc>, window_params = [{transform_indices = @transform_0, window_bounds = array<i64: 8, 64>}, {transform_indices = @transform_1, window_bounds = array<i64: 64, 16>}, {transform_indices = @transform_2, window_bounds = array<i64: 8, 1>}, {transform_indices = @transform_3, window_bounds = array<i64: 8, 16>}, {pipeline_mode = #tpu.pipeline_mode<synchronous>, transform_indices = @transform_4, window_bounds = array<i64: 1, 16>}, {transform_indices = @transform_5, window_bounds = array<i64: 8, 16>}]} {
    %c0_i32 = arith.constant 0 : i32
    %0 = arith.cmpi eq, %arg1, %c0_i32 : i32
    %1 = arith.extui %0 : i1 to i32
    %c0_i32_0 = arith.constant 0 : i32
    %2 = arith.cmpi ne, %1, %c0_i32_0 : i32
    scf.if %2 {
      %cst_10 = arith.constant 0.000000e+00 : f32
      %12 = vector.broadcast %cst_10 : f32 to vector<8x16xf32>
      %c0_11 = arith.constant 0 : index
      %c0_12 = arith.constant 0 : index
      %13 = vector.load %arg8[%c0_11, %c0_12] : memref<8x16xf32, #tpu.memory_space<vmem>>, vector<8x16xf32>
      tpu.vector_store %arg8[%c0_11, %c0_12], %12 {strides = array<i32>} : memref<8x16xf32, #tpu.memory_space<vmem>>, vector<8x16xf32>,
    } else {
    }
    %c0 = arith.constant 0 : index
    %c0_1 = arith.constant 0 : index
    %3 = vector.load %arg8[%c0, %c0_1] : memref<8x16xf32, #tpu.memory_space<vmem>>, vector<8x16xf32>
    %c0_2 = arith.constant 0 : index
    %c0_3 = arith.constant 0 : index
    %4 = vector.load %arg2[%c0_2, %c0_3] : memref<8x64xbf16, #tpu.memory_space<vmem>>, vector<8x64xbf16>
    %c0_4 = arith.constant 0 : index
    %c0_5 = arith.constant 0 : index
    %5 = vector.load %arg3[%c0_4, %c0_5] : memref<64x16xbf16, #tpu.memory_space<vmem>>, vector<64x16xbf16>
    %cst = arith.constant dense<0.000000e+00> : vector<8x16xf32>
    %6 = tpu.matmul %4, %5, %cst {dimension_numbers = #tpu.dot_dimension_numbers<[1], [0], [0], [1], [0, 0, 1, 1], [], []>} : vector<8x64xbf16>, vector<64x16xbf16>, vector<8x16xf32> -> vector<8x16xf32>
    %7 = arith.addf %3, %6 : vector<8x16xf32>
    %c0_6 = arith.constant 0 : index
    %c0_7 = arith.constant 0 : index
    %8 = vector.load %arg8[%c0_6, %c0_7] : memref<8x16xf32, #tpu.memory_space<vmem>>, vector<8x16xf32>
    tpu.vector_store %arg8[%c0_6, %c0_7], %7 {strides = array<i32>} : memref<8x16xf32, #tpu.memory_space<vmem>>, vector<8x16xf32>,
    %c0_i32_8 = arith.constant 0 : i32
    %9 = arith.cmpi eq, %arg1, %c0_i32_8 : i32
    %10 = arith.extui %9 : i1 to i32
    %c0_i32_9 = arith.constant 0 : i32
    %11 = arith.cmpi ne, %10, %c0_i32_9 : i32
    scf.if %11 {
      %c0_10 = arith.constant 0 : index
      %c0_11 = arith.constant 0 : index
      %12 = vector.load %arg4[%c0_10, %c0_11] : memref<8x1xf32, #tpu.memory_space<vmem>>, vector<8x1xf32>
      %c0_12 = arith.constant 0 : index
      %c0_13 = arith.constant 0 : index
      %13 = vector.load %arg8[%c0_12, %c0_13] : memref<8x16xf32, #tpu.memory_space<vmem>>, vector<8x16xf32>
      %c0_14 = arith.constant 0 : index
      %c0_15 = arith.constant 0 : index
      %14 = vector.load %arg5[%c0_14, %c0_15] : memref<8x16xf32, #tpu.memory_space<vmem>>, vector<8x16xf32>
      %15 = arith.addf %13, %14 : vector<8x16xf32>
      %16 = vector.broadcast %12 : vector<8x1xf32> to vector<8x16xf32>
      %17 = arith.mulf %16, %15 : vector<8x16xf32>
      %c0_16 = arith.constant 0 : index
      %c0_17 = arith.constant 0 : index
      %18 = vector.load %arg6[%c0_16, %c0_17] : memref<1x16xf32, #tpu.memory_space<vmem>>, vector<1x16xf32>
      %19 = vector.broadcast %18 : vector<1x16xf32> to vector<8x16xf32>
      %20 = arith.addf %17, %19 : vector<8x16xf32>
      %c0_18 = arith.constant 0 : index
      %c0_19 = arith.constant 0 : index
      %21 = vector.load %arg7[%c0_18, %c0_19] : memref<8x16xf32, #tpu.memory_space<vmem>>, vector<8x16xf32>
      tpu.vector_store %arg7[%c0_18, %c0_19], %20 {strides = array<i32>} : memref<8x16xf32, #tpu.memory_space<vmem>>, vector<8x16xf32>,
    } else {
    }
    return
  }
  func.func @transform_0(%arg0: i32, %arg1: i32) -> (i32, i32) {
    %c0_i32 = arith.constant 0 : i32
    return %arg0, %arg1 : i32, i32
  }
  func.func @transform_1(%arg0: i32, %arg1: i32) -> (i32, i32) {
    %c0_i32 = arith.constant 0 : i32
    %c0_i32_0 = arith.constant 0 : i32
    return %arg1, %c0_i32 : i32, i32
  }
  func.func @transform_2(%arg0: i32, %arg1: i32) -> (i32, i32) {
    %c0_i32 = arith.constant 0 : i32
    %c0_i32_0 = arith.constant 0 : i32
    return %arg0, %c0_i32 : i32, i32
  }
  func.func @transform_3(%arg0: i32, %arg1: i32) -> (i32, i32) {
    %c0_i32 = arith.constant 0 : i32
    %c0_i32_0 = arith.constant 0 : i32
    return %arg0, %c0_i32 : i32, i32
  }
  func.func @transform_4(%arg0: i32, %arg1: i32) -> (i32, i32) {
    %c0_i32 = arith.constant 0 : i32
    %c0_i32_0 = arith.constant 0 : i32
    %c0_i32_1 = arith.constant 0 : i32
    return %c0_i32, %c0_i32_0 : i32, i32
  }
  func.func @transform_5(%arg0: i32, %arg1: i32) -> (i32, i32) {
    %c0_i32 = arith.constant 0 : i32
    %c0_i32_0 = arith.constant 0 : i32
    return %arg0, %c0_i32 : i32, i32
  }
}

</mosaic_0001>

<bundles_post_ra>
// kernel: fm_gcn_model_forward.1
= control target key start
LH: loop header
LB: loop body
LE: loop exit
PB: predicated region body
PF: predicated region fallthrough
CT: control target
= control target key end

     0   :  { %v165_v0 = vmov 0.0   ;;  %vm166_vm0 = vmmov 0   ;;  %vm25_vm1 = vcmask 130048   ;;  %v167_v2 = vmov 0   ;;  %s228_s1 = inlined_call_operand.vmem [shape: bf16[64,16], index: 1, kind: input, shape index: {}]   ;;  %s229_s2 = inlined_call_operand.vmem [shape: f32[8,1], index: 2, kind: input, shape index: {}]   ;;  %s230_s0 = inlined_call_operand.vmem [shape: bf16[8,64], index: 0, kind: input, shape index: {}]   ;;  %s231_s3 = inlined_call_operand.vmem [shape: f32[8,16], index: 3, kind: input, shape index: {}]   ;;  %s232_s4 = inlined_call_operand.vmem [shape: f32[1,16], index: 4, kind: input, shape index: {}]   ;;  %s233_s5 = inlined_call_operand.vmem [shape: f32[8,16], index: 5, kind: output, shape index: {}]  }
   0x1   :  { %145 = vmatprep.subr.bf16.mxu0 %v165_v0  ;;  %v161_v1 = vld [vmem:[%s228_s1 + $0x18] sm:$0xff]   ;;  %153 = vmatprep.mubr.msk.bf16.mxu0 %vm166_vm0, %v165_v0  ;;  %26 = vst.msk [vmem:[#allocation2] sm:$0xff] %vm25_vm1, %v165_v0  ;;  %v162_v3 = vld [vmem:[%s228_s1 + $0x10] sm:$0xff]   ;;  %v111_v4 = vld [vmem:[%s229_s2] sm:$0xff]  ;;  %vm61_vm2 = vcmask 523264  }
   0x2   :  { %160 = vset.pattern.permute.xlu0 %v167_v2  ;;  %146 = vmatpush3.bf16.msra.mxu0 %v161_v1  ;;  %v163_v5 = vld [vmem:[%s228_s1 + $0x8] sm:$0xff]   ;;  %v164_v6 = vld [vmem:[%s228_s1] sm:$0xff]  }
   0x3   :  { %147 = vmatprep.subr.bf16.mxu0 %v165_v0  ;;  %117 = vperm.xlu0 %160, %v111_v4   ;;  %v28_v7 = vld [vmem:[%s230_s0] sm:$0xf] }
   0x4   :  { %v113_v14 = vld [vmem:[%s231_s3] sm:$0xff] }
   0x5   :  { %v139_v18 = vld [vmem:[%s232_s4] ss:$0 sm:$0xff] }
   0x6   :  { %148 = vmatpush3.bf16.msra.mxu0 %v162_v3 }
   0x7   :  { %149 = vmatprep.subr.bf16.mxu0 %v165_v0 }
   0x8   :  { %v27_v8 = vld [vmem:[#allocation2] sm:$0xff] }
   0xa   :  { %150 = vmatpush3.bf16.msra.mxu0 %v163_v5 }
   0xb   :  { %151 = vmatprep.subr.bf16.mxu0 %v165_v0 }
   0xe   :  { %152 = vmatpush3.bf16.msra.mxu0 %v164_v6 }
  0x11   :  { %154 = vmatmul.mubr.msk.bf16.vlgmr.msra.gmra.mxu0 %vm61_vm2, %v28_v7 }
  0x7e   :  { %v118_v15 = vpop.permute.xlu0 %117 }
  0xd1   :  { %v99_v9 = vpop.f32.mrf.mxu0 }
  0xd2   :  { %v105_v10 = vadd.f32 %v99_v9, %v27_v8 }
  0xd3   :  { %v155_v11 = vpop.f32.mrf.mxu0 }
  0xd4   :  { %107 = vst.msk [vmem:[#allocation2] sm:$0xff] %vm25_vm1, %v105_v10 }
  0xd5   :  { %v102_v12 = vpop.f32.mrf.mxu0 }
  0xd7   :  { %v156_v13 = vpop.f32.mrf.mxu0 }
  0xdb   :  { %v112_v16 = vld [vmem:[#allocation2] sm:$0xff] }
  0xdc   :  { %v114_v17 = vadd.f32 %v113_v14, %v112_v16 }
  0xde   :  { %v120_v19 = vmul.f32 %v118_v15, %v114_v17 }
  0xe0   :  { %v128_v20 = vadd.f32 %v139_v18, %v120_v19 }
  0xe2   :  { %129 = vst.msk [vmem:[%s233_s5] sm:$0xff] %vm25_vm1, %v128_v20 }

</bundles_post_ra>
